<compile_context>
chip_gen: v7x
topology: tpu7x:2x2x1
jax: 0.10.0
libtpu: 0.0.40
codegen_flags: <defaults>
</compile_context>

<pallas_src>
import math
import numpy as np
import jax
import jax.numpy as jnp
from jax.experimental import pallas as pl
from jax.experimental.pallas import tpu as pltpu


# ---------------------------------------------------------------------------
# Geometry helpers
# ---------------------------------------------------------------------------
def _round_up(x, m):
    return ((x + m - 1) // m) * m


def _pad_geom(H, W):
    # 1-pixel conv halo on top/left; bottom/right padded further so the flat
    # padded image length L = Hp*Wp is a multiple of 128 (full lane tiles ->
    # every vector op and the final HBM store are unmasked & lane dense).
    Hp = _round_up(H + 2, 4)
    Wp = _round_up(W + 2, 32)
    return Hp, Wp, Hp * Wp


def _mm_dims(cfg):
    # im2col patch rows: 9 taps * tap_stride channels, + 1 bias row, padded to
    # a multiple of 8 sublanes.  Output rows padded to a multiple of 8 too.
    tap_stride = max(cfg["n_colors"], cfg["n_feats"], cfg["c_body2"])
    bias_row = 9 * tap_stride
    KP = _round_up(bias_row + 1, 8)
    MOUT = _round_up(max(cfg["n_feats"], cfg["c_body2"], cfg["c_tail1"]), 8)
    return tap_stride, bias_row, KP, MOUT


# ---------------------------------------------------------------------------
# pltpu.roll convention probe (one tiny pallas_call at setup time).
# We need shifted[:, p] == x[:, p + off]; the probe tells us which sign of
# shift to use so the kernel is correct under either rotate convention.
# ---------------------------------------------------------------------------
def _probe_roll_is_numpy():
    def k(x_ref, o_ref):
        o_ref[...] = pltpu.roll(x_ref[...], 1, axis=1)

    x = jnp.tile(jnp.arange(128, dtype=jnp.float32)[None, :], (8, 1))
    y = pl.pallas_call(
        k, out_shape=jax.ShapeDtypeStruct((8, 128), jnp.float32))(x)
    # numpy convention: roll(x, 1)[0] == x[-1] == 127
    return bool(np.asarray(y)[0, 0] == 127.0)


# ---------------------------------------------------------------------------
# Fused Pallas kernel: whole EDSR forward for one image per grid step.
# ---------------------------------------------------------------------------
def _make_fused_edsr_kernel(cfg, H, W, roll_is_numpy):
    n_res, nf = cfg["n_resblocks"], cfg["n_feats"]
    ncol, cb2, ct1 = cfg["n_colors"], cfg["c_body2"], cfg["c_tail1"]
    Hp, Wp, L = _pad_geom(H, W)
    ts, bias_row, KP, MOUT = _mm_dims(cfg)

    def shifted(v, off):
        # shifted[:, p] == v[:, p + off] for every p we keep (interior pixels);
        # wrapped values only land on halo positions that get masked to zero.
        if off == 0:
            return v
        amt = (-off) % L if roll_is_numpy else off % L
        return pltpu.roll(v, amt, axis=1)

    def kernel(x_ref, w_ref, sel_ref, mask_ref, o_ref, patch_ref):
        mask = mask_ref[...]                                   # (1, L) interior mask

        # One small memset per image: guarantees every patch row a (zero-padded)
        # weight column can touch holds a finite value, then install the bias
        # row (= interior mask, so bias only lands on interior pixels).
        patch_ref[...] = jnp.zeros((KP, L), jnp.float32)
        patch_ref[bias_row:bias_row + 1, :] = mask

        def conv(v, cin, li, cout, relu=False):
            # im2col into the shared VMEM patch, then ONE MXU dot per layer:
            #   (MOUT, KP) @ (KP, L)  with the flat padded image on the lanes.
            for tap in range(9):
                ky, kx = tap // 3, tap % 3
                off = (ky - 1) * Wp + (kx - 1)
                patch_ref[tap * ts: tap * ts + cin, :] = shifted(v, off)
            out = jnp.dot(w_ref[li], patch_ref[...],
                          preferred_element_type=jnp.float32)  # (MOUT, L)
            out = out[:cout, :] * mask                         # re-zero the halo
            return jnp.maximum(out, 0.0) if relu else out

        # head (op1 gate folded into its weights / bias on the host)
        x1 = conv(x_ref[...], ncol, 0, nf)                     # (nf, L)
        # op2-selected channels of x1 for the long skip (tiny 0/1 matmul)
        x1_skip = jnp.dot(sel_ref[...], x1,
                          preferred_element_type=jnp.float32)  # (cb2, L)

        # residual body (input_gate folded into conv1, res_scale into conv2)
        res = x1
        for i in range(n_res):
            h = conv(res, nf, 1 + 2 * i, nf, relu=True)
            res = res + conv(h, nf, 2 + 2 * i, nf)

        # body2 + long skip, then tail1 -> single lane-dense HBM store
        res2 = conv(res, nf, 1 + 2 * n_res, cb2) + x1_skip
        o_ref[...] = conv(res2, cb2, 2 + 2 * n_res, ct1)

    return kernel


def edsr_forward_pallas(fp, cfg, x_nchw, roll_is_numpy):
    n_res, nf = cfg["n_resblocks"], cfg["n_feats"]
    ncol, cb2, ct1 = cfg["n_colors"], cfg["c_body2"], cfg["c_tail1"]
    N, C, H, W = x_nchw.shape
    Hp, Wp, L = _pad_geom(H, W)
    _, _, KP, MOUT = _mm_dims(cfg)
    n_conv = 3 + 2 * n_res

    rgb_mean = jnp.array([0.4488, 0.4371, 0.4040], jnp.float32) * cfg["rgb_range"]
    x = x_nchw.astype(jnp.float32) - rgb_mean[None, :, None, None]       # sub_mean
    xp = jnp.pad(x, ((0, 0), (0, 0), (1, Hp - H - 1), (1, Wp - W - 1)))  # one pad
    x_flat = xp.reshape(N, C, L)                                          # (N, 3, L)

    m2 = np.zeros((Hp, Wp), np.float32)
    m2[1:1 + H, 1:1 + W] = 1.0
    mask = jnp.asarray(m2.reshape(1, L))

    kernel = _make_fused_edsr_kernel(cfg, H, W, roll_is_numpy)
    out = pl.pallas_call(
        kernel,
        out_shape=jax.ShapeDtypeStruct((N, ct1, L), jnp.float32),
        grid=(N,),
        in_specs=[
            pl.BlockSpec((None, ncol, L), lambda n: (n, 0, 0)),      # padded input
            pl.BlockSpec((n_conv, MOUT, KP), lambda n: (0, 0, 0)),   # packed W+b slab
            pl.BlockSpec((cb2, nf), lambda n: (0, 0)),               # op2 selector
            pl.BlockSpec((1, L), lambda n: (0, 0)),                  # interior mask
        ],
        out_specs=pl.BlockSpec((None, ct1, L), lambda n: (n, 0, 0)),
        scratch_shapes=[pltpu.VMEM((KP, L), jnp.float32)],           # shared im2col patch
        compiler_params=pltpu.CompilerParams(
            dimension_semantics=("parallel",)),                      # 2 images -> 2 TCs on v7x
    )(x_flat, fp["slab"], fp["sel"], mask)

    # cheap host-side glue on the tiny final tensor
    out = out.reshape(N, ct1, Hp, Wp)[:, :, 1:1 + H, 1:1 + W]        # drop halo
    out = jnp.transpose(out, (0, 2, 3, 1))                           # NHWC
    for _ in range(int(round(math.log2(cfg["scale"])))):
        out = pixel_shuffle_nhwc(out, 2)
    out = out + rgb_mean                                             # add_mean
    return jnp.transpose(out, (0, 3, 1, 2))                          # NCHW


# ---------------------------------------------------------------------------
# Glue ops
# ---------------------------------------------------------------------------
def pixel_shuffle_nhwc(x, r):
    """torch.nn.PixelShuffle(r) semantics, NHWC layout."""
    N, H, W, Cr2 = x.shape
    Co = Cr2 // (r * r)
    x = x.reshape(N, H, W, Co, r, r)
    x = x.transpose(0, 1, 4, 2, 5, 3)        # N, H, r_i, W, r_j, Co
    return x.reshape(N, H * r, W * r, Co)


# ---------------------------------------------------------------------------
# Parameters (deterministic synthetic), gate folding / packing, JAX reference
# ---------------------------------------------------------------------------
def make_params(key, cfg):
    n_feats, n_colors = cfg["n_feats"], cfg["n_colors"]
    n_res, c_body2, c_tail1 = cfg["n_resblocks"], cfg["c_body2"], cfg["c_tail1"]

    def conv_init(k, cin, cout):
        kw, kb = jax.random.split(k)
        w = jax.random.normal(kw, (3, 3, cin, cout), jnp.float32) / np.sqrt(9 * cin)
        b = 0.01 * jax.random.normal(kb, (cout,), jnp.float32)
        return w, b

    ks = jax.random.split(key, 2 * n_res + 3)
    params = {"head": conv_init(ks[0], n_colors, n_feats), "body": []}
    for i in range(n_res):
        w1, b1 = conv_init(ks[1 + 2 * i], n_feats, n_feats)
        w2, b2 = conv_init(ks[2 + 2 * i], n_feats, n_feats)
        params["body"].append((w1, b1, w2, b2))
    params["body2"] = conv_init(ks[2 * n_res + 1], n_feats, c_body2)
    params["tail1"] = conv_init(ks[2 * n_res + 2], c_body2, c_tail1)

    # gates following the __init__ arithmetic of the module (synthetic args)
    op1 = 0.5 + 0.5 * (jnp.arange(n_feats, dtype=jnp.float32) % 2)
    op2 = np.zeros((n_feats,), np.float32); op2[:c_body2] = 1.0
    skip = jnp.ones((n_res, n_feats), jnp.float32)
    resconv3 = jnp.tile((jnp.arange(n_feats) % 2).astype(jnp.float32), (n_res, 1))

    skip_gate = jnp.concatenate([op1[None], skip], axis=0)
    resconv3_gate = jnp.concatenate([op1[None], resconv3], axis=0)
    in_gate = skip_gate + resconv3_gate - resconv3_gate * skip_gate
    input_gate = jnp.concatenate([jnp.ones((1, n_feats), jnp.float32), in_gate], 0)

    params["op1"] = op1
    params["op2"] = op2
    params["input_gate"] = input_gate
    return params


def fold_params(params, cfg):
    """Fold all per-channel gates into the convs and pack everything into one
    (n_conv, MOUT, KP) weight slab (bias in column `bias_row`) + op2 selector."""
    n_res, nf = cfg["n_resblocks"], cfg["n_feats"]
    cb2 = cfg["c_body2"]
    res_scale = np.float32(cfg["res_scale"])
    ts, bias_row, KP, MOUT = _mm_dims(cfg)
    n_conv = 3 + 2 * n_res

    op1 = np.asarray(params["op1"], np.float32)
    input_gate = np.asarray(params["input_gate"], np.float32)

    convs = []
    w = np.asarray(params["head"][0], np.float32)
    b = np.asarray(params["head"][1], np.float32)
    convs.append((w * op1[None, None, None, :], b * op1))                   # fold op1
    for i, (w1, b1, w2, b2) in enumerate(params["body"]):
        g = input_gate[i]
        convs.append((np.asarray(w1, np.float32) * g[None, None, :, None],  # input gate
                      np.asarray(b1, np.float32)))
        convs.append((np.asarray(w2, np.float32) * res_scale,               # res_scale
                      np.asarray(b2, np.float32) * res_scale))
    convs.append(tuple(np.asarray(a, np.float32) for a in params["body2"]))
    convs.append(tuple(np.asarray(a, np.float32) for a in params["tail1"]))
    assert len(convs) == n_conv

    slab = np.zeros((n_conv, MOUT, KP), np.float32)
    for li, (w, b) in enumerate(convs):
        cin, cout = w.shape[2], w.shape[3]
        wt = np.transpose(w, (3, 0, 1, 2))                                  # (cout, ky, kx, cin)
        for tap in range(9):
            ky, kx = tap // 3, tap % 3
            slab[li, :cout, tap * ts: tap * ts + cin] = wt[:, ky, kx, :]
        slab[li, :cout, bias_row] = b                                        # bias column

    idx2 = np.nonzero(np.asarray(params["op2"]))[0]
    sel = np.zeros((cb2, nf), np.float32)
    sel[np.arange(idx2.size), idx2] = 1.0                                    # x1_skip = sel @ x1
    return {"slab": jnp.asarray(slab), "sel": jnp.asarray(sel)}


def conv3x3_ref(x, w, b):
    y = jax.lax.conv_general_dilated(
        x, w, window_strides=(1, 1), padding="SAME",
        dimension_numbers=("NHWC", "HWIO", "NHWC"),
        precision=jax.lax.Precision.HIGHEST)
    return y + b


def edsr_forward_ref(params, cfg, x_nchw):
    """Pure-JAX reference mirroring the PyTorch forward (unfolded params)."""
    rgb_mean = jnp.array([0.4488, 0.4371, 0.4040], jnp.float32) * cfg["rgb_range"]
    x = jnp.transpose(x_nchw, (0, 2, 3, 1)).astype(jnp.float32) - rgb_mean
    x1 = conv3x3_ref(x, *params["head"]) * params["op1"]
    res = x1
    for i, (w1, b1, w2, b2) in enumerate(params["body"]):
        g = params["input_gate"][i]
        h = jax.nn.relu(conv3x3_ref(res * g, w1, b1))
        res = res + conv3x3_ref(h, w2, b2) * cfg["res_scale"]
    idx2 = np.nonzero(np.asarray(params["op2"]))[0]
    res2 = conv3x3_ref(res, *params["body2"]) + x1[..., idx2]
    out = conv3x3_ref(res2, *params["tail1"])
    for _ in range(int(round(math.log2(cfg["scale"])))):
        out = pixel_shuffle_nhwc(out, 2)
    out = out + rgb_mean
    return jnp.transpose(out, (0, 3, 1, 2))


# ---------------------------------------------------------------------------
if __name__ == "__main__":
    cfg = dict(
        n_colors=3,
        n_feats=8,
        n_resblocks=2,
        scale=4,
        rgb_range=255.0,
        res_scale=0.1,
        c_body2=6,            # int(op2.sum())
        c_tail1=48,           # int(op_last.sum()) = n_colors * scale**2
    )

    roll_is_numpy = _probe_roll_is_numpy()

    key = jax.random.PRNGKey(0)
    kp, kx = jax.random.split(key)
    params = make_params(kp, cfg)
    folded = fold_params(params, cfg)

    x = jax.random.uniform(kx, (2, cfg["n_colors"], 16, 16), jnp.float32) * cfg["rgb_range"]

    fwd = jax.jit(lambda p, xin: edsr_forward_pallas(p, cfg, xin, roll_is_numpy))
    y = jax.block_until_ready(fwd(folded, x))

    # correctness check of the fused kernel (and the host-side gate folding)
    y_ref = jax.block_until_ready(edsr_forward_ref(params, cfg, x))
    np.testing.assert_allclose(np.asarray(y), np.asarray(y_ref),
                               rtol=5e-3, atol=5e-1)

    assert y.shape == (2, 3, 64, 64), y.shape
    assert y.dtype == jnp.float32
    print("KERNEL_OK")
</pallas_src>

<mosaic_0001>
module attributes {stable_mosaic.version = 11 : i64} {
  func.func @k(%arg0: memref<8x128xf32, #tpu.memory_space<vmem>>, %arg1: memref<8x128xf32, #tpu.memory_space<vmem>>) attributes {dimension_semantics = [], scalar_prefetch = 0 : i64, scratch_operands = 0 : i64, tpu.core_type = #tpu.core_type<tc>} {
    %c0 = arith.constant 0 : index
    %c0_0 = arith.constant 0 : index
    %0 = vector.load %arg0[%c0, %c0_0] : memref<8x128xf32, #tpu.memory_space<vmem>>, vector<8x128xf32>
    %c1_i32 = arith.constant 1 : i32
    %1 = tpu.dynamic_rotate %0 by %c1_i32 dim 1 : vector<8x128xf32>, i32 -> vector<8x128xf32>
    %c0_1 = arith.constant 0 : index
    %c0_2 = arith.constant 0 : index
    %2 = vector.load %arg1[%c0_1, %c0_2] : memref<8x128xf32, #tpu.memory_space<vmem>>, vector<8x128xf32>
    tpu.vector_store %arg1[%c0_1, %c0_2], %1 {strides = array<i32>} : memref<8x128xf32, #tpu.memory_space<vmem>>, vector<8x128xf32>,
    return
  }
}

</mosaic_0001>

<bundles_post_ra>
// kernel: tpu_custom_call.1
= control target key start
LH: loop header
LB: loop body
LE: loop exit
PB: predicated region body
PF: predicated region fallthrough
CT: control target
= control target key end

     0   :  { %6 = vsyncpa [#allocation3], 0  ;;  %s128_s0 = inlined_call_operand.hbm [shape: f32[8,128], index: 0, kind: input, shape index: {}]   ;;  %s129_s1 = inlined_call_operand.hbm [shape: f32[8,128], index: 1, kind: output, shape index: {}]  }
   0x1   :  { %7 = vsyncpa [#allocation4], 0  ;;  %s91_s6 = smov [#allocation2]   ;;  %s43_s10 = scalar_lea.hbm %s128_s0, 128 }
   0x2   :  { %s14_s7 = sshll.u32 %s91_s6, 4  ;;  %p44_p0 = scmp.ne.s32.totalorder %s128_s0, %s43_s10  ;;  %s15_s7 = int_to_ptr.vmem [resolvable:$true] %s14_s7 }
   0x3   :  { %p47_p1 = scmp.lt.u32.totalorder %s43_s10, %s128_s0 }
   0x5   :  { %p49_p2 = pnand %p47_p1, %p44_p0 }
   0x7   :  { %52 = shalt.err (!%p49_p2)
}
   0x8   :  { %s53_s15 = scalar_lea.vmem %s15_s7, 128  ;;  %p58_p4 = scmp.lt.s32.totalorder %s15_s7, %s15_s7 }
   0x9   :  { %p54_p3 = scmp.ne.s32.totalorder %s15_s7, %s53_s15  ;;  %p59_p5 = scmp.lt.s32.totalorder %s53_s15, %s53_s15 }
   0xb   :  { %p60_p6 = por %p59_p5, %p58_p4 }
   0xd   :  { %p61_p7 = pnand %p60_p6, %p54_p3 }
   0xf   :  { %64 = shalt.err (!%p61_p7)
}
  0x10   :  { %17 = dma.hbm_to_vmem [thread:$0]  %s128_s0, 128, %s15_s7, [#allocation3]  }
  0x11   :  { %87 = dma.done.wait [#allocation3], 128  }
  0x12   :  { %88 = vsyncadd [#allocation3], 4294967168  ;;  %v21_v0 = vld [vmem:[#allocation2] sm:$0xff]  ;;  %s92_s18 = smov 1   ;;  %s93_s19 = smov [#allocation5]  }
  0x13   :  { %22 = vrot.lane.b32.xlu0 %v21_v0, %s92_s18  ;;  %s31_s20 = sshll.u32 %s93_s19, 4  ;;  %s32_s20 = int_to_ptr.vmem [resolvable:$true] %s31_s20 }
  0x14   :  { %s65_s21 = scalar_lea.vmem %s32_s20, 128  ;;  %p70_p9 = scmp.lt.s32.totalorder %s32_s20, %s32_s20 }
  0x15   :  { %p66_p8 = scmp.ne.s32.totalorder %s32_s20, %s65_s21  ;;  %p71_p10 = scmp.lt.s32.totalorder %s65_s21, %s65_s21 }
  0x17   :  { %p72_p11 = por %p71_p10, %p70_p9 }
  0x19   :  { %p73_p12 = pnand %p72_p11, %p66_p8 }
  0x85   :  { %v23_v1 = vpop.permute.xlu0 %22 }
  0x86   :  { %24 = vst [vmem:[#allocation5] sm:$0xff] %v23_v1 }
  0x87   :  { %76 = shalt.err (!%p73_p12)
}
  0x88   :  { %s77_s0 = scalar_lea.hbm %s129_s1, 128 }
  0x89   :  { %p78_p13 = scmp.ne.s32.totalorder %s129_s1, %s77_s0  ;;  %p81_p0 = scmp.lt.u32.totalorder %s77_s0, %s129_s1 }
  0x8b   :  { %p83_p1 = pnand %p81_p0, %p78_p13 }
  0x8d   :  { %86 = shalt.err (!%p83_p1)
}
  0x8e   :  { %34 = dma.vmem_to_hbm [thread:$0]  %s32_s20, 128, %s129_s1, [#allocation4]  }
  0x8f   :  { %89 = dma.done.wait [#allocation4], 128  }
  0x90   :  { %90 = vsyncadd [#allocation4], 4294967168 }
  0x91   :  { %38 = vsyncpa [#allocation3], 1 }
  0x92   :  { %39 = vsyncpa [#allocation4], 1 }

</bundles_post_ra>
